<compile_context>
chip_gen: v7x
topology: tpu7x:2x2x1
jax: 0.10.0
libtpu: 0.0.40
codegen_flags: <defaults>
</compile_context>

<pallas_src>
import jax
import jax.numpy as jnp
from jax.experimental import pallas as pl
from jax.experimental.pallas import tpu as pltpu


def _cca_kernel(x_ref, w1t_ref, b1_ref, w2_ref, b2_ref, o_ref):
    # x_ref block: (B, C, HW) -- channels on sublanes, spatial positions on lanes.
    bsz, _, hw = x_ref.shape
    inv_hw = 1.0 / hw

    w1t = w1t_ref[...]          # (C, C_red)
    b1 = b1_ref[...]            # (1, C_red)
    w2 = w2_ref[...]            # (C, C_red)
    b2 = b2_ref[...]            # (C, 1)

    # Small static unroll over the samples in the block.  Per-sample f32 temporaries
    # are only (C, HW) (not the whole block), and each iteration is the proven 2-D
    # code path from the previous version.
    for b in range(bsz):
        x = x_ref[b]                                   # (C, HW), native dtype
        xf = x.astype(jnp.float32)                     # no-op for f32 inputs

        # Per-channel mean / population std over the lane axis (XLU reduces).
        mean = jnp.sum(xf, axis=-1, keepdims=True) * inv_hw        # (C, 1)
        d = xf - mean
        var = jnp.sum(d * d, axis=-1, keepdims=True) * inv_hw      # centered: matches torch
        y = mean + jnp.sqrt(var)                                   # (C, 1): contrast + avg_pool

        # Tiny channel MLP kept off the MXU (VPU broadcast-mul + XLU reduce):
        #   h = relu(W1 @ y + b1)    with W1: (C_red, C), passed transposed as (C, C_red)
        #   z = sigmoid(W2 @ h + b2) with W2: (C, C_red)
        h = jnp.sum(w1t * y, axis=0, keepdims=True) + b1           # (1, C_red)
        h = jnp.maximum(h, 0.0)
        z = jnp.sum(w2 * h, axis=-1, keepdims=True) + b2           # (C, 1)
        z = jax.nn.sigmoid(z)                                      # EUP

        # Channel re-weighting, broadcast along the lane (spatial) axis; cast on store.
        o_ref[b] = (xf * z).astype(o_ref.dtype)


def _pick_sample_batch(n, sample_bytes, target_block_bytes=2 << 20, max_unroll=16):
    """Largest divisor of n keeping the block under the target and the unroll small."""
    cap = max(1, min(max_unroll, target_block_bytes // max(sample_bytes, 1)))
    best = 1
    for b in range(1, min(n, cap) + 1):
        if n % b == 0:
            best = b
    return best


def cca_layer(x_nchw, w1, b1, w2, b2):
    """x_nchw: (N, C, H, W); w1: (C_red, C); b1: (C_red,); w2: (C, C_red); b2: (C,)"""
    N, C, H, W = x_nchw.shape
    C_red = w1.shape[0]
    HW = H * W
    itemsize = x_nchw.dtype.itemsize

    # Free reshapes of contiguous NCHW data -- no extra HBM passes.
    x = x_nchw.reshape(N, C, HW)
    w1t = jnp.transpose(w1)            # (C, C_red)  tiny, one-time
    b1r = b1.reshape(1, C_red)
    b2c = b2.reshape(C, 1)

    # Batch samples per grid step so blocks land in the ~1-2 MiB sweet spot.
    sample_bytes = C * HW * itemsize
    B = _pick_sample_batch(N, sample_bytes)
    block_bytes = B * sample_bytes

    # Generation-aware VMEM budget: in + out blocks double-buffered, plus per-sample
    # f32 temporaries, capped with headroom under the physical VMEM (64 MiB on v7x).
    try:
        vmem_cap = int(pltpu.get_tpu_info().vmem_capacity_bytes) * 3 // 4
    except Exception:
        vmem_cap = 48 * 2**20
    f32_temp_bytes = 3 * C * HW * 4
    need = 4 * block_bytes + f32_temp_bytes + (2 << 20)
    vmem_limit = int(min(vmem_cap, max(16 * 2**20, need)))
    # TODO(synk): if a single (C, HW) sample overflows this budget (very large images),
    # switch to a tiled-HW two-phase (stats pass + scale pass) or manual-DMA structure.
    # TODO(synk): if HW is not a multiple of 128, lane-pad (or fold channels into lanes)
    # in the caller for unmasked stores; the kernel is correct either way.

    cost = pl.CostEstimate(
        flops=6 * N * C * HW,                      # sum + centered square-sum + scale
        transcendentals=2 * N * C,                 # sqrt + sigmoid per channel
        bytes_accessed=2 * N * C * HW * itemsize,  # memory-bound: 1 read + 1 write of x
    )

    out = pl.pallas_call(
        _cca_kernel,
        out_shape=jax.ShapeDtypeStruct((N, C, HW), x_nchw.dtype),
        grid_spec=pltpu.PrefetchScalarGridSpec(
            num_scalar_prefetch=0,
            grid=(N // B,),
            in_specs=[
                pl.BlockSpec((B, C, HW), lambda n: (n, 0, 0)),
                pl.BlockSpec((C, C_red), lambda n: (0, 0)),
                pl.BlockSpec((1, C_red), lambda n: (0, 0)),
                pl.BlockSpec((C, C_red), lambda n: (0, 0)),
                pl.BlockSpec((C, 1), lambda n: (0, 0)),
            ],
            out_specs=pl.BlockSpec((B, C, HW), lambda n: (n, 0, 0)),
        ),
        compiler_params=pltpu.CompilerParams(
            # TODO(synk): on v7x with a grid of 1 (tiny N), add a second parallel axis
            # (or CORE_PARALLEL) so both TensorCores get work.
            dimension_semantics=("parallel",),
            vmem_limit_bytes=vmem_limit,
        ),
        cost_estimate=cost,
    )(x, w1t, b1r, w2, b2c)

    # Free reshape back to NCHW.
    return out.reshape(N, C, H, W)


def cca_reference(x, w1, b1, w2, b2):
    """Pure-JAX reference mirroring the PyTorch forward (NCHW, population std)."""
    xf = x.astype(jnp.float32)
    mean = jnp.mean(xf, axis=(2, 3), keepdims=True)
    std = jnp.sqrt(jnp.mean((xf - mean) ** 2, axis=(2, 3), keepdims=True))
    y = (mean + std)[..., 0, 0]                            # (N, C)
    h = jnp.maximum(y @ w1.T + b1, 0.0)                    # (N, C_red)
    z = jax.nn.sigmoid(h @ w2.T + b2)                      # (N, C)
    return (xf * z[:, :, None, None]).astype(x.dtype)


if __name__ == "__main__":
    # Small shapes consistent with the module: channels divisible by reduction=16,
    # HW = 256 (multiple of 128 -> lane-dense stores).
    N, C, H, W = 2, 32, 16, 16
    reduction = 16
    C_red = C // reduction

    key = jax.random.PRNGKey(0)
    kx, k1, kb1, k2, kb2 = jax.random.split(key, 5)
    x = jax.random.normal(kx, (N, C, H, W), dtype=jnp.float32)

    # Deterministic synthetic parameters (shapes from nn.Conv2d(C, C//r, 1) / (C//r, C, 1)).
    w1 = 0.1 * jax.random.normal(k1, (C_red, C), dtype=jnp.float32)
    b1 = 0.05 * jax.random.normal(kb1, (C_red,), dtype=jnp.float32)
    w2 = 0.1 * jax.random.normal(k2, (C, C_red), dtype=jnp.float32)
    b2 = 0.05 * jax.random.normal(kb2, (C,), dtype=jnp.float32)

    out = cca_layer(x, w1, b1, w2, b2)
    out = jax.block_until_ready(out)

    ref = cca_reference(x, w1, b1, w2, b2)
    assert out.shape == (N, C, H, W)
    assert jnp.allclose(out, ref, atol=1e-4, rtol=1e-4), "mismatch vs reference"

    print("KERNEL_OK")
</pallas_src>

<mosaic_0001>
module attributes {stable_mosaic.version = 11 : i64} {
  func.func @_cca_kernel(%arg0: i32, %arg1: memref<2x32x256xf32, #tpu.memory_space<vmem>>, %arg2: memref<32x2xf32, #tpu.memory_space<vmem>>, %arg3: memref<1x2xf32, #tpu.memory_space<vmem>>, %arg4: memref<32x2xf32, #tpu.memory_space<vmem>>, %arg5: memref<32x1xf32, #tpu.memory_space<vmem>>, %arg6: memref<2x32x256xf32, #tpu.memory_space<vmem>>) attributes {dimension_semantics = [#tpu.dimension_semantics<parallel>], iteration_bounds = array<i64: 1>, scalar_prefetch = 0 : i64, scratch_operands = 0 : i64, tpu.core_type = #tpu.core_type<tc>, window_params = [{transform_indices = @transform_0, window_bounds = array<i64: 2, 32, 256>}, {pipeline_mode = #tpu.pipeline_mode<synchronous>, transform_indices = @transform_1, window_bounds = array<i64: 32, 2>}, {pipeline_mode = #tpu.pipeline_mode<synchronous>, transform_indices = @transform_2, window_bounds = array<i64: 1, 2>}, {pipeline_mode = #tpu.pipeline_mode<synchronous>, transform_indices = @transform_3, window_bounds = array<i64: 32, 2>}, {pipeline_mode = #tpu.pipeline_mode<synchronous>, transform_indices = @transform_4, window_bounds = array<i64: 32, 1>}, {transform_indices = @transform_5, window_bounds = array<i64: 2, 32, 256>}]} {
    %c0 = arith.constant 0 : index
    %c0_0 = arith.constant 0 : index
    %0 = vector.load %arg2[%c0, %c0_0] : memref<32x2xf32, #tpu.memory_space<vmem>>, vector<32x2xf32>
    %c0_1 = arith.constant 0 : index
    %c0_2 = arith.constant 0 : index
    %1 = vector.load %arg3[%c0_1, %c0_2] : memref<1x2xf32, #tpu.memory_space<vmem>>, vector<1x2xf32>
    %c0_3 = arith.constant 0 : index
    %c0_4 = arith.constant 0 : index
    %2 = vector.load %arg4[%c0_3, %c0_4] : memref<32x2xf32, #tpu.memory_space<vmem>>, vector<32x2xf32>
    %c0_5 = arith.constant 0 : index
    %c0_6 = arith.constant 0 : index
    %3 = vector.load %arg5[%c0_5, %c0_6] : memref<32x1xf32, #tpu.memory_space<vmem>>, vector<32x1xf32>
    %c0_7 = arith.constant 0 : index
    %c0_8 = arith.constant 0 : index
    %c0_9 = arith.constant 0 : index
    %4 = vector.load %arg1[%c0_7, %c0_8, %c0_9] : memref<2x32x256xf32, #tpu.memory_space<vmem>>, vector<1x32x256xf32>
    %5 = vector.shape_cast %4 : vector<1x32x256xf32> to vector<32x256xf32>
    %cst = arith.constant dense<0.000000e+00> : vector<32xf32>
    %6 = vector.multi_reduction <add>, %5, %cst [1] : vector<32x256xf32> to vector<32xf32>
    %7 = vector.shape_cast %6 : vector<32xf32> to vector<32x1xf32>
    %cst_10 = arith.constant 3.906250e-03 : f32
    %8 = vector.broadcast %cst_10 : f32 to vector<32x1xf32>
    %9 = arith.mulf %7, %8 : vector<32x1xf32>
    %10 = vector.broadcast %9 : vector<32x1xf32> to vector<32x256xf32>
    %11 = arith.subf %5, %10 : vector<32x256xf32>
    %12 = arith.mulf %11, %11 : vector<32x256xf32>
    %cst_11 = arith.constant dense<0.000000e+00> : vector<32xf32>
    %13 = vector.multi_reduction <add>, %12, %cst_11 [1] : vector<32x256xf32> to vector<32xf32>
    %14 = vector.shape_cast %13 : vector<32xf32> to vector<32x1xf32>
    %cst_12 = arith.constant 3.906250e-03 : f32
    %15 = vector.broadcast %cst_12 : f32 to vector<32x1xf32>
    %16 = arith.mulf %14, %15 : vector<32x1xf32>
    %17 = math.sqrt %16 : vector<32x1xf32>
    %18 = arith.addf %9, %17 : vector<32x1xf32>
    %19 = vector.broadcast %18 : vector<32x1xf32> to vector<32x2xf32>
    %20 = arith.mulf %0, %19 : vector<32x2xf32>
    %cst_13 = arith.constant dense<0.000000e+00> : vector<2xf32>
    %21 = vector.multi_reduction <add>, %20, %cst_13 [0] : vector<32x2xf32> to vector<2xf32>
    %22 = vector.shape_cast %21 : vector<2xf32> to vector<1x2xf32>
    %23 = arith.addf %22, %1 : vector<1x2xf32>
    %cst_14 = arith.constant 0.000000e+00 : f32
    %24 = vector.broadcast %cst_14 : f32 to vector<1x2xf32>
    %25 = arith.maximumf %23, %24 : vector<1x2xf32>
    %26 = vector.broadcast %25 : vector<1x2xf32> to vector<32x2xf32>
    %27 = arith.mulf %2, %26 : vector<32x2xf32>
    %cst_15 = arith.constant dense<0.000000e+00> : vector<32xf32>
    %28 = vector.multi_reduction <add>, %27, %cst_15 [1] : vector<32x2xf32> to vector<32xf32>
    %29 = vector.shape_cast %28 : vector<32xf32> to vector<32x1xf32>
    %30 = arith.addf %29, %3 : vector<32x1xf32>
    %31 = arith.negf %30 : vector<32x1xf32>
    %32 = math.exp %31 : vector<32x1xf32>
    %cst_16 = arith.constant 1.000000e+00 : f32
    %33 = vector.broadcast %cst_16 : f32 to vector<32x1xf32>
    %34 = arith.addf %33, %32 : vector<32x1xf32>
    %35 = arith.divf %33, %34 : vector<32x1xf32>
    %36 = vector.broadcast %35 : vector<32x1xf32> to vector<32x256xf32>
    %37 = arith.mulf %5, %36 : vector<32x256xf32>
    %c0_17 = arith.constant 0 : index
    %c0_18 = arith.constant 0 : index
    %c0_19 = arith.constant 0 : index
    %38 = vector.load %arg6[%c0_17, %c0_18, %c0_19] : memref<2x32x256xf32, #tpu.memory_space<vmem>>, vector<1x32x256xf32>
    %39 = vector.shape_cast %38 : vector<1x32x256xf32> to vector<32x256xf32>
    %40 = vector.shape_cast %37 : vector<32x256xf32> to vector<1x32x256xf32>
    tpu.vector_store %arg6[%c0_17, %c0_18, %c0_19], %40 {strides = array<i32>} : memref<2x32x256xf32, #tpu.memory_space<vmem>>, vector<1x32x256xf32>,
    %c1 = arith.constant 1 : index
    %c0_20 = arith.constant 0 : index
    %c0_21 = arith.constant 0 : index
    %41 = vector.load %arg1[%c1, %c0_20, %c0_21] : memref<2x32x256xf32, #tpu.memory_space<vmem>>, vector<1x32x256xf32>
    %42 = vector.shape_cast %41 : vector<1x32x256xf32> to vector<32x256xf32>
    %cst_22 = arith.constant dense<0.000000e+00> : vector<32xf32>
    %43 = vector.multi_reduction <add>, %42, %cst_22 [1] : vector<32x256xf32> to vector<32xf32>
    %44 = vector.shape_cast %43 : vector<32xf32> to vector<32x1xf32>
    %cst_23 = arith.constant 3.906250e-03 : f32
    %45 = vector.broadcast %cst_23 : f32 to vector<32x1xf32>
    %46 = arith.mulf %44, %45 : vector<32x1xf32>
    %47 = vector.broadcast %46 : vector<32x1xf32> to vector<32x256xf32>
    %48 = arith.subf %42, %47 : vector<32x256xf32>
    %49 = arith.mulf %48, %48 : vector<32x256xf32>
    %cst_24 = arith.constant dense<0.000000e+00> : vector<32xf32>
    %50 = vector.multi_reduction <add>, %49, %cst_24 [1] : vector<32x256xf32> to vector<32xf32>
    %51 = vector.shape_cast %50 : vector<32xf32> to vector<32x1xf32>
    %cst_25 = arith.constant 3.906250e-03 : f32
    %52 = vector.broadcast %cst_25 : f32 to vector<32x1xf32>
    %53 = arith.mulf %51, %52 : vector<32x1xf32>
    %54 = math.sqrt %53 : vector<32x1xf32>
    %55 = arith.addf %46, %54 : vector<32x1xf32>
    %56 = vector.broadcast %55 : vector<32x1xf32> to vector<32x2xf32>
    %57 = arith.mulf %0, %56 : vector<32x2xf32>
    %cst_26 = arith.constant dense<0.000000e+00> : vector<2xf32>
    %58 = vector.multi_reduction <add>, %57, %cst_26 [0] : vector<32x2xf32> to vector<2xf32>
    %59 = vector.shape_cast %58 : vector<2xf32> to vector<1x2xf32>
    %60 = arith.addf %59, %1 : vector<1x2xf32>
    %cst_27 = arith.constant 0.000000e+00 : f32
    %61 = vector.broadcast %cst_27 : f32 to vector<1x2xf32>
    %62 = arith.maximumf %60, %61 : vector<1x2xf32>
    %63 = vector.broadcast %62 : vector<1x2xf32> to vector<32x2xf32>
    %64 = arith.mulf %2, %63 : vector<32x2xf32>
    %cst_28 = arith.constant dense<0.000000e+00> : vector<32xf32>
    %65 = vector.multi_reduction <add>, %64, %cst_28 [1] : vector<32x2xf32> to vector<32xf32>
    %66 = vector.shape_cast %65 : vector<32xf32> to vector<32x1xf32>
    %67 = arith.addf %66, %3 : vector<32x1xf32>
    %68 = arith.negf %67 : vector<32x1xf32>
    %69 = math.exp %68 : vector<32x1xf32>
    %cst_29 = arith.constant 1.000000e+00 : f32
    %70 = vector.broadcast %cst_29 : f32 to vector<32x1xf32>
    %71 = arith.addf %70, %69 : vector<32x1xf32>
    %72 = arith.divf %70, %71 : vector<32x1xf32>
    %73 = vector.broadcast %72 : vector<32x1xf32> to vector<32x256xf32>
    %74 = arith.mulf %42, %73 : vector<32x256xf32>
    %c1_30 = arith.constant 1 : index
    %c0_31 = arith.constant 0 : index
    %c0_32 = arith.constant 0 : index
    %75 = vector.load %arg6[%c1_30, %c0_31, %c0_32] : memref<2x32x256xf32, #tpu.memory_space<vmem>>, vector<1x32x256xf32>
    %76 = vector.shape_cast %75 : vector<1x32x256xf32> to vector<32x256xf32>
    %77 = vector.shape_cast %74 : vector<32x256xf32> to vector<1x32x256xf32>
    tpu.vector_store %arg6[%c1_30, %c0_31, %c0_32], %77 {strides = array<i32>} : memref<2x32x256xf32, #tpu.memory_space<vmem>>, vector<1x32x256xf32>,
    return
  }
  func.func @transform_0(%arg0: i32) -> (i32, i32, i32) {
    %c0_i32 = arith.constant 0 : i32
    %c0_i32_0 = arith.constant 0 : i32
    %c0_i32_1 = arith.constant 0 : i32
    return %arg0, %c0_i32, %c0_i32_0 : i32, i32, i32
  }
  func.func @transform_1(%arg0: i32) -> (i32, i32) {
    %c0_i32 = arith.constant 0 : i32
    %c0_i32_0 = arith.constant 0 : i32
    %c0_i32_1 = arith.constant 0 : i32
    return %c0_i32, %c0_i32_0 : i32, i32
  }
  func.func @transform_2(%arg0: i32) -> (i32, i32) {
    %c0_i32 = arith.constant 0 : i32
    %c0_i32_0 = arith.constant 0 : i32
    %c0_i32_1 = arith.constant 0 : i32
    return %c0_i32, %c0_i32_0 : i32, i32
  }
  func.func @transform_3(%arg0: i32) -> (i32, i32) {
    %c0_i32 = arith.constant 0 : i32
    %c0_i32_0 = arith.constant 0 : i32
    %c0_i32_1 = arith.constant 0 : i32
    return %c0_i32, %c0_i32_0 : i32, i32
  }
  func.func @transform_4(%arg0: i32) -> (i32, i32) {
    %c0_i32 = arith.constant 0 : i32
    %c0_i32_0 = arith.constant 0 : i32
    %c0_i32_1 = arith.constant 0 : i32
    return %c0_i32, %c0_i32_0 : i32, i32
  }
  func.func @transform_5(%arg0: i32) -> (i32, i32, i32) {
    %c0_i32 = arith.constant 0 : i32
    %c0_i32_0 = arith.constant 0 : i32
    %c0_i32_1 = arith.constant 0 : i32
    return %arg0, %c0_i32, %c0_i32_0 : i32, i32, i32
  }
}

</mosaic_0001>

<bundles_post_ra>
// kernel: tpu_custom_call.1
= control target key start
LH: loop header
LB: loop body
LE: loop exit
PB: predicated region body
PF: predicated region fallthrough
CT: control target
= control target key end

     0   :  { %10 = vsyncpa [#allocation3], 0  ;;  %s853_s0 = inlined_call_operand.hbm [shape: f32[2,32,256], index: 0, kind: input, shape index: {}]   ;;  %s854_s1 = inlined_call_operand.vmem [shape: f32[32,2], index: 1, kind: input, shape index: {}]   ;;  %s855_s2 = inlined_call_operand.vmem [shape: f32[1,2], index: 2, kind: input, shape index: {}]   ;;  %s856_s3 = inlined_call_operand.vmem [shape: f32[32,2], index: 3, kind: input, shape index: {}]   ;;  %s857_s4 = inlined_call_operand.vmem [shape: f32[32,1], index: 4, kind: input, shape index: {}]   ;;  %s858_s5 = inlined_call_operand.hbm [shape: f32[2,32,256], index: 5, kind: output, shape index: {}]  }
   0x1   :  { %11 = vsyncpa [#allocation4], 0  ;;  %s561_s18 = smov [#allocation2]   ;;  %s513_s22 = scalar_lea.hbm %s853_s0, 2048 }
   0x2   :  { %s17_s19 = sshll.u32 %s561_s18, 4  ;;  %p514_p0 = scmp.ne.s32.totalorder %s853_s0, %s513_s22  ;;  %s18_s19 = int_to_ptr.vmem [resolvable:$true] %s17_s19 }
   0x3   :  { %p517_p1 = scmp.lt.u32.totalorder %s513_s22, %s853_s0 }
   0x5   :  { %p519_p2 = pnand %p517_p1, %p514_p0 }
   0x7   :  { %522 = shalt.err (!%p519_p2)
}
   0x8   :  { %s523_s27 = scalar_lea.vmem %s18_s19, 2048  ;;  %p528_p4 = scmp.lt.s32.totalorder %s18_s19, %s18_s19 }
   0x9   :  { %p524_p3 = scmp.ne.s32.totalorder %s18_s19, %s523_s27  ;;  %p529_p5 = scmp.lt.s32.totalorder %s523_s27, %s523_s27 }
   0xb   :  { %p530_p6 = por %p529_p5, %p528_p4 }
   0xd   :  { %p531_p7 = pnand %p530_p6, %p524_p3 }
   0xf   :  { %534 = shalt.err (!%p531_p7)
}
  0x10   :  { %s562_s28 = smov 256   ;;  %s563_s29 = smov 16  }
  0x11   :  { %23 = dma.hbm_to_vmem [thread:$0]  %s853_s0, 2048, %s18_s19, [#allocation3], %s562_s28, %s562_s28, %s563_s29  }
  0x12   :  { %557 = dma.done.wait [#allocation3], 2048  }
  0x13   :  { %558 = vsyncadd [#allocation3], 4294965248  ;;  %v611_v0 = vld [vmem:[#allocation2] sm:$0xff]  ;;  %v613_v1 = vld [vmem:[#allocation2 + $0x8] sm:$0xff]  ;;  %vm140_vm6 = vcmask 15360  }
  0x14   :  { %v615_v2 = vld [vmem:[#allocation2 + $0x40] sm:$0xff]  ;;  %v56_v3 = vadd.f32 %v613_v1, %v611_v0  ;;  %v619_v4 = vld [vmem:[#allocation2 + $0x48] sm:$0xff]  ;;  %v621_v5 = vld [vmem:[#allocation2 + $0x10] sm:$0xff] }
  0x15   :  { %v623_v6 = vld [vmem:[#allocation2 + $0x18] sm:$0xff]  ;;  %v249_v7 = vadd.f32 %v619_v4, %v615_v2  ;;  %v627_v8 = vld [vmem:[#allocation2 + $0x50] sm:$0xff]  ;;  %v635_v12 = vld [vmem:[#allocation2 + $0x20] sm:$0xff] }
  0x16   :  { %v629_v9 = vld [vmem:[#allocation2 + $0x58] sm:$0xff]  ;;  %57 = vadd.xlane.f32.xlu0 %v56_v3  ;;  %v59_v10 = vadd.f32 %v623_v6, %v621_v5  ;;  %v637_v13 = vld [vmem:[#allocation2 + $0x28] sm:$0xff]  ;;  %v639_v14 = vld [vmem:[#allocation2 + $0x60] sm:$0xff] }
  0x17   :  { %250 = vadd.xlane.f32.xlu1 %v249_v7  ;;  %v252_v11 = vadd.f32 %v629_v9, %v627_v8  ;;  %v641_v15 = vld [vmem:[#allocation2 + $0x68] sm:$0xff]  ;;  %v62_v16 = vadd.f32 %v637_v13, %v635_v12  ;;  %v647_v18 = vld [vmem:[#allocation2 + $0x30] sm:$0xff]  ;;  %v649_v19 = vld [vmem:[#allocation2 + $0x38] sm:$0xff] }
  0x18   :  { %v255_v17 = vadd.f32 %v641_v15, %v639_v14  ;;  %v651_v20 = vld [vmem:[#allocation2 + $0x70] sm:$0xff]  ;;  %v653_v21 = vld [vmem:[#allocation2 + $0x78] sm:$0xff]  ;;  %v65_v22 = vadd.f32 %v649_v19, %v647_v18 }
  0x19   :  { %v258_v23 = vadd.f32 %v653_v21, %v651_v20 }
  0x1a   :  { %60 = vadd.xlane.f32.xlu0 %v59_v10 }
  0x1b   :  { %253 = vadd.xlane.f32.xlu1 %v252_v11 }
  0x1e   :  { %63 = vadd.xlane.f32.xlu0 %v62_v16 }
  0x1f   :  { %256 = vadd.xlane.f32.xlu1 %v255_v17 }
  0x22   :  { %66 = vadd.xlane.f32.xlu0 %v65_v22 }
  0x23   :  { %259 = vadd.xlane.f32.xlu1 %v258_v23 }
  0xa3   :  { %v58_v24 = vpop.xlane.xlu0 %57 }
  0xa4   :  { %v659_v25 = vmul.f32 0.00390625, %v58_v24  ;;  %v251_v26 = vpop.xlane.xlu1 %250 }
  0xa5   :  { %v661_v27 = vmul.f32 0.00390625, %v251_v26 }
  0xa6   :  { %v72_v28 = vsub.f32 %v611_v0, %v659_v25  ;;  %v73_v29 = vsub.f32 %v613_v1, %v659_v25 }
  0xa7   :  { %v61_v30 = vpop.xlane.xlu0 %60  ;;  %v265_v31 = vsub.f32 %v615_v2, %v661_v27  ;;  %v266_v32 = vsub.f32 %v619_v4, %v661_v27 }
  0xa8   :  { %v671_v33 = vmul.f32 0.00390625, %v61_v30  ;;  %v254_v34 = vpop.xlane.xlu1 %253  ;;  %v80_v35 = vmul.f32 %v72_v28, %v72_v28  ;;  %v81_v36 = vmul.f32 %v73_v29, %v73_v29 }
  0xa9   :  { %v673_v37 = vmul.f32 0.00390625, %v254_v34  ;;  %v273_v38 = vmul.f32 %v265_v31, %v265_v31  ;;  %v274_v39 = vmul.f32 %v266_v32, %v266_v32 }
  0xaa   :  { %v88_v40 = vadd.f32 %v81_v36, %v80_v35  ;;  %v74_v41 = vsub.f32 %v621_v5, %v671_v33  ;;  %v75_v42 = vsub.f32 %v623_v6, %v671_v33 }
  0xab   :  { %v64_v43 = vpop.xlane.xlu0 %63  ;;  %v267_v44 = vsub.f32 %v627_v8, %v673_v37  ;;  %v268_v45 = vsub.f32 %v629_v9, %v673_v37  ;;  %v281_v48 = vadd.f32 %v274_v39, %v273_v38 }
  0xac   :  { %v683_v46 = vmul.f32 0.00390625, %v64_v43  ;;  %89 = vadd.xlane.f32.xlu0 %v88_v40  ;;  %v257_v47 = vpop.xlane.xlu1 %256  ;;  %v82_v49 = vmul.f32 %v74_v41, %v74_v41  ;;  %v83_v50 = vmul.f32 %v75_v42, %v75_v42 }
  0xad   :  { %v685_v51 = vmul.f32 0.00390625, %v257_v47  ;;  %v275_v52 = vmul.f32 %v267_v44, %v267_v44  ;;  %v276_v53 = vmul.f32 %v268_v45, %v268_v45 }
  0xae   :  { %v91_v54 = vadd.f32 %v83_v50, %v82_v49  ;;  %v76_v55 = vsub.f32 %v635_v12, %v683_v46  ;;  %v77_v56 = vsub.f32 %v637_v13, %v683_v46 }
  0xaf   :  { %v67_v57 = vpop.xlane.xlu0 %66  ;;  %v269_v58 = vsub.f32 %v639_v14, %v685_v51  ;;  %v270_v59 = vsub.f32 %v641_v15, %v685_v51  ;;  %v284_v62 = vadd.f32 %v276_v53, %v275_v52 }
  0xb0   :  { %v695_v60 = vmul.f32 0.00390625, %v67_v57  ;;  %282 = vadd.xlane.f32.xlu0 %v281_v48  ;;  %92 = vadd.xlane.f32.xlu1 %v91_v54  ;;  %v260_v61 = vpop.xlane.xlu1 %259  ;;  %v84_v63 = vmul.f32 %v76_v55, %v76_v55  ;;  %v85_v3 = vmul.f32 %v77_v56, %v77_v56 }
  0xb1   :  { %v697_v7 = vmul.f32 0.00390625, %v260_v61  ;;  %v277_v10 = vmul.f32 %v269_v58, %v269_v58  ;;  %v278_v11 = vmul.f32 %v270_v59, %v270_v59 }
  0xb2   :  { %v94_v16 = vadd.f32 %v85_v3, %v84_v63  ;;  %v78_v17 = vsub.f32 %v647_v18, %v695_v60  ;;  %v79_v22 = vsub.f32 %v649_v19, %v695_v60 }
  0xb3   :  { %v271_v23 = vsub.f32 %v651_v20, %v697_v7  ;;  %v272_v24 = vsub.f32 %v653_v21, %v697_v7  ;;  %v287_v26 = vadd.f32 %v278_v11, %v277_v10 }
  0xb4   :  { %285 = vadd.xlane.f32.xlu1 %v284_v62  ;;  %95 = vadd.xlane.f32.xlu0 %v94_v16  ;;  %v86_v28 = vmul.f32 %v78_v17, %v78_v17  ;;  %v87_v29 = vmul.f32 %v79_v22, %v79_v22 }
  0xb5   :  { %v279_v30 = vmul.f32 %v271_v23, %v271_v23  ;;  %v280_v31 = vmul.f32 %v272_v24, %v272_v24 }
  0xb6   :  { %v97_v32 = vadd.f32 %v87_v29, %v86_v28 }
  0xb7   :  { %v290_v34 = vadd.f32 %v280_v31, %v279_v30 }
  0xb8   :  { %288 = vadd.xlane.f32.xlu1 %v287_v26  ;;  %98 = vadd.xlane.f32.xlu0 %v97_v32  ;;  %v36_v26 = vld [vmem:[%s854_s1 + $0x8] sm:$0xff] }
  0xbc   :  { %291 = vadd.xlane.f32.xlu1 %v290_v34 }
 0x139   :  { %v90_v35 = vpop.xlane.xlu0 %89 }
 0x13a   :  { %v100_v36 = vmul.f32 0.00390625, %v90_v35  ;;  %v35_v35 = vld [vmem:[%s854_s1] sm:$0xff] }
 0x13c   :  { %465 = vrsqrt.f32 %v100_v36  ;;  %vm106_vm0 = vcmp.eq.f32.partialorder %v100_v36, inf  ;;  %vm108_vm1 = vcmp.eq.f32.partialorder %v100_v36, 0.0  ;;  %v109_v57 = vand.u32 2147483648, %v100_v36 }
 0x13d   :  { %v93_v38 = vpop.xlane.xlu1 %92  ;;  %v283_v39 = vpop.xlane.xlu0 %282 }
 0x13e   :  { %v101_v40 = vmul.f32 0.00390625, %v93_v38  ;;  %v293_v41 = vmul.f32 0.00390625, %v283_v39 }
 0x140   :  { %467 = vrsqrt.f32 %v101_v40  ;;  %vm113_vm2 = vcmp.eq.f32.partialorder %v101_v40, inf  ;;  %vm115_vm3 = vcmp.eq.f32.partialorder %v101_v40, 0.0  ;;  %v116_v62 = vand.u32 2147483648, %v101_v40 }
 0x141   :  { %469 = vrsqrt.f32 %v293_v41  ;;  %v286_v42 = vpop.xlane.xlu1 %285  ;;  %v96_v43 = vpop.xlane.xlu0 %95  ;;  %vm299_vm4 = vcmp.eq.f32.partialorder %v293_v41, inf  ;;  %vm301_vm5 = vcmp.eq.f32.partialorder %v293_v41, 0.0  ;;  %v302_v3 = vand.u32 2147483648, %v293_v41 }
 0x142   :  { %v294_v44 = vmul.f32 0.00390625, %v286_v42  ;;  %v707_v45 = vmul.f32 0.00390625, %v96_v43 }
 0x144   :  { %471 = vrsqrt.f32 %v294_v44  ;;  %vm306_vm7 = vcmp.eq.f32.partialorder %v294_v44, inf  ;;  %vm308_vm8 = vcmp.eq.f32.partialorder %v294_v44, 0.0  ;;  %v309_v23 = vand.u32 2147483648, %v294_v44 }
 0x145   :  { %473 = vrsqrt.f32 %v707_v45  ;;  %v289_v47 = vpop.xlane.xlu1 %288  ;;  %v99_v48 = vpop.xlane.xlu0 %98  ;;  %vm120_vm9 = vcmp.eq.f32.partialorder %v707_v45, inf  ;;  %vm122_vm10 = vcmp.eq.f32.partialorder %v707_v45, 0.0  ;;  %v123_v30 = vand.u32 2147483648, %v707_v45 }
 0x146   :  { %v466_v49 = vpop.eup %465  ;;  %v710_v50 = vmul.f32 0.00390625, %v289_v47  ;;  %v712_v52 = vmul.f32 0.00390625, %v99_v48  ;;  %v37_v47 = vld [vmem:[%s854_s1 + $0x10] sm:$0xff] }
 0x147   :  { %v105_v53 = vmul.f32 %v466_v49, %v100_v36 }
 0x148   :  { %475 = vrsqrt.f32 %v710_v50  ;;  %vm313_vm11 = vcmp.eq.f32.partialorder %v710_v50, inf  ;;  %vm315_vm12 = vcmp.eq.f32.partialorder %v710_v50, 0.0  ;;  %vm127_vm13 = vcmp.eq.f32.partialorder %v712_v52, inf }
 0x149   :  { %477 = vrsqrt.f32 %v712_v52  ;;  %v292_v54 = vpop.xlane.xlu1 %291  ;;  %v107_v56 = vsel %vm106_vm0, %v100_v36, %v105_v53  ;;  %vm129_vm14 = vcmp.eq.f32.partialorder %v712_v52, 0.0 }
 0x14a   :  { %v468_v55 = vpop.eup %467  ;;  %v716_v58 = vmul.f32 0.00390625, %v292_v54  ;;  %v110_v10 = vsel %vm108_vm1, %v109_v57, %v107_v56 }
 0x14b   :  { %v470_v59 = vpop.eup %469  ;;  %v112_v61 = vmul.f32 %v468_v55, %v101_v40  ;;  %v132_v31 = vadd.f32 %v110_v10, %v659_v25  ;;  %v130_v55 = vand.u32 2147483648, %v712_v52 }
 0x14c   :  { %v298_v63 = vmul.f32 %v470_v59, %v293_v41  ;;  %479 = vrsqrt.f32 %v716_v58  ;;  %vm320_vm15 = vcmp.eq.f32.partialorder %v716_v58, inf  ;;  %vm322_vm0 = vcmp.eq.f32.partialorder %v716_v58, 0.0 }
 0x14d   :  { %v114_v11 = vsel %vm113_vm2, %v101_v40, %v112_v61  ;;  %v136_v49 = vmul.f32 %v132_v31, %v35_v35 }
 0x14e   :  { %v472_v16 = vpop.eup %471  ;;  %v117_v17 = vsel %vm115_vm3, %v116_v62, %v114_v11  ;;  %v300_v22 = vsel %vm299_vm4, %v293_v41, %v298_v63  ;;  %v38_v63 = vld [vmem:[%s854_s1 + $0x18] sm:$0xff] }
 0x14f   :  { %v474_v24 = vpop.eup %473  ;;  %v133_v28 = vadd.f32 %v117_v17, %v671_v33  ;;  %v305_v29 = vmul.f32 %v472_v16, %v294_v44  ;;  %v303_v32 = vsel %vm301_vm5, %v302_v3, %v300_v22  ;;  %v316_v33 = vand.u32 2147483648, %v710_v50 }
 0x150   :  { %v119_v34 = vmul.f32 %v474_v24, %v707_v45  ;;  %v325_v42 = vadd.f32 %v303_v32, %v661_v27  ;;  %v141_v11 = vsel %vm140_vm6, %v136_v49, 0.0  ;;  %v323_v16 = vand.u32 2147483648, %v716_v58 }
 0x151   :  { %v307_v36 = vsel %vm306_vm7, %v294_v44, %v305_v29  ;;  %v137_v25 = vmul.f32 %v133_v28, %v36_v26 }
 0x152   :  { %v476_v38 = vpop.eup %475  ;;  %v310_v39 = vsel %vm308_vm8, %v309_v23, %v307_v36  ;;  %v121_v40 = vsel %vm120_vm9, %v707_v45, %v119_v34  ;;  %v329_v61 = vmul.f32 %v325_v42, %v35_v35 }
 0x153   :  { %v478_v41 = vpop.eup %477  ;;  %v326_v43 = vadd.f32 %v310_v39, %v673_v37  ;;  %v124_v48 = vsel %vm122_vm10, %v123_v30, %v121_v40  ;;  %v312_v44 = vmul.f32 %v476_v38, %v710_v50  ;;  %v142_v45 = vsel %vm140_vm6, %v137_v25, 0.0 }
 0x154   :  { %v134_v53 = vadd.f32 %v124_v48, %v683_v46  ;;  %v126_v54 = vmul.f32 %v478_v41, %v712_v52  ;;  %v143_v24 = vadd.f32 %v142_v45, %v141_v11  ;;  %v333_v28 = vsel %vm140_vm6, %v329_v61, 0.0  ;;  %v41_v45 = vld [vmem:[%s856_s3 + $0x8] sm:$0xff]  ;;  %v43_v61 = vld [vmem:[%s856_s3 + $0x18] sm:$0xff] }
 0x155   :  { %v330_v56 = vmul.f32 %v326_v43, %v36_v26  ;;  %v314_v27 = vsel %vm313_vm11, %v710_v50, %v312_v44  ;;  %v156_v41 = vlaneseq  ;;  %v39_v44 = vld [vmem:[%s855_s2] sm:$0x1] }
 0x156   :  { %v480_v37 = vpop.eup %479  ;;  %v138_v57 = vmul.f32 %v134_v53, %v37_v47  ;;  %v317_v46 = vsel %vm315_vm12, %v316_v33, %v314_v27  ;;  %v128_v59 = vsel %vm127_vm13, %v712_v52, %v126_v54 }
 0x157   :  { %v327_v62 = vadd.f32 %v317_v46, %v685_v51  ;;  %v131_v3 = vsel %vm129_vm14, %v130_v55, %v128_v59  ;;  %v319_v10 = vmul.f32 %v480_v37, %v716_v58  ;;  %v334_v22 = vsel %vm140_vm6, %v330_v56, 0.0 }
 0x158   :  { %v135_v50 = vadd.f32 %v131_v3, %v695_v60  ;;  %v144_v17 = vsel %vm140_vm6, %v138_v57, 0.0  ;;  %v335_v32 = vadd.f32 %v334_v22, %v333_v28  ;;  %v157_v48 = vshrl.u32 %v156_v41, 7  ;;  %v40_v57 = vld [vmem:[%s856_s3] sm:$0xff] }
 0x159   :  { %v331_v51 = vmul.f32 %v327_v62, %v37_v47  ;;  %v321_v23 = vsel %vm320_vm15, %v716_v58, %v319_v10  ;;  %v145_v29 = vadd.f32 %v144_v17, %v143_v24  ;;  %v42_v62 = vld [vmem:[%s856_s3 + $0x10] sm:$0xff] }
 0x15a   :  { %v139_v52 = vmul.f32 %v135_v50, %v38_v63  ;;  %v324_v26 = vsel %vm322_vm0, %v323_v16, %v321_v23  ;;  %v158_v56 = vsub.s32 0, %v157_v48 }
 0x15b   :  { %v328_v60 = vadd.f32 %v324_v26, %v697_v7  ;;  %v336_v30 = vsel %vm140_vm6, %v331_v51, 0.0 }
 0x15c   :  { %v146_v31 = vsel %vm140_vm6, %v139_v52, 0.0  ;;  %v337_v36 = vadd.f32 %v336_v30, %v335_v32  ;;  %v564_v32 = vmov 0  }
 0x15d   :  { %v332_v34 = vmul.f32 %v328_v60, %v38_v63  ;;  %v147_v35 = vadd.f32 %v146_v31, %v145_v29  ;;  %464 = vset.pattern.permute.xlu1 %v564_v32  ;;  %463 = vset.pattern.permute.xlu0 %v564_v32 }
 0x15f   :  { %v148_v33 = vrot.slane %v147_v35, 4  ;;  %v338_v38 = vsel %vm140_vm6, %v332_v34, 0.0  ;;  %v45_v34 = vld [vmem:[%s857_s4 + $0x8] sm:$0xff] }
 0x160   :  { %v339_v25 = vadd.f32 %v338_v38, %v337_v36 }
 0x161   :  { %v149_v39 = vadd.f32 %v148_v33, %v147_v35  ;;  %v44_v35 = vld [vmem:[%s857_s4] sm:$0xff] }
 0x162   :  { %v340_v58 = vrot.slane %v339_v25, 4 }
 0x163   :  { %v150_v40 = vrot.slane %v149_v39, 2 }
 0x164   :  { %v341_v42 = vadd.f32 %v340_v58, %v339_v25  ;;  %v46_v58 = vld [vmem:[%s857_s4 + $0x10] sm:$0xff] }
 0x165   :  { %v151_v43 = vadd.f32 %v150_v40, %v149_v39  ;;  %v47_v39 = vld [vmem:[%s857_s4 + $0x18] sm:$0xff]  ;;  %s565_s4 = smov [#allocation5]  }
 0x166   :  { %v342_v7 = vrot.slane %v341_v42, 2  ;;  %s438_s6 = sshll.u32 %s565_s4, 4  ;;  %s439_s6 = int_to_ptr.vmem [resolvable:$true] %s438_s6 }
 0x167   :  { %v152_v47 = vrot.slane %v151_v43, 1  ;;  %s535_s0 = scalar_lea.vmem %s439_s6, 2048  ;;  %p540_p9 = scmp.lt.s32.totalorder %s439_s6, %s439_s6 }
 0x168   :  { %v343_v49 = vadd.f32 %v342_v7, %v341_v42  ;;  %p536_p8 = scmp.ne.s32.totalorder %s439_s6, %s535_s0  ;;  %p541_p10 = scmp.lt.s32.totalorder %s535_s0, %s535_s0 }
 0x169   :  { %v153_v53 = vadd.f32 %v152_v47, %v151_v43 }
 0x16a   :  { %v344_v54 = vrot.slane %v343_v49, 1  ;;  %p542_p11 = por %p541_p10, %p540_p9 }
 0x16b   :  { %v154_v55 = vadd.f32 %v153_v53, %v39_v44 }
 0x16c   :  { %v345_v27 = vadd.f32 %v344_v54, %v343_v49  ;;  %p543_p12 = pnand %p542_p11, %p536_p8 }
 0x16d   :  { %v155_v37 = vmax.f32 %v154_v55, 0.0 }
 0x16e   :  { %v346_v46 = vadd.f32 %v345_v27, %v39_v44 }
 0x16f   :  { %v159_v59 = vrot.slane %v155_v37, %v158_v56 }
 0x170   :  { %v347_v63 = vmax.f32 %v346_v46, 0.0 }
 0x171   :  { %v161_v3 = vmul.f32 %v159_v59, %v41_v45  ;;  %v160_v10 = vmul.f32 %v159_v59, %v40_v57  ;;  %v163_v11 = vmul.f32 %v159_v59, %v43_v61  ;;  %v162_v17 = vmul.f32 %v159_v59, %v42_v62 }
 0x172   :  { %v351_v22 = vrot.slane %v347_v63, %v158_v56 }
 0x173   :  { %v167_v50 = vsel %vm140_vm6, %v161_v3, 0.0  ;;  %v164_v16 = vsel %vm140_vm6, %v160_v10, 0.0  ;;  %v173_v51 = vsel %vm140_vm6, %v163_v11, 0.0  ;;  %v170_v23 = vsel %vm140_vm6, %v162_v17, 0.0 }
 0x174   :  { %168 = vadd.xlane.f32.xlu1 %v167_v50  ;;  %165 = vadd.xlane.f32.xlu0 %v164_v16  ;;  %v353_v24 = vmul.f32 %v351_v22, %v41_v45  ;;  %v352_v52 = vmul.f32 %v351_v22, %v40_v57  ;;  %v355_v60 = vmul.f32 %v351_v22, %v43_v61 }
 0x175   :  { %v354_v29 = vmul.f32 %v351_v22, %v42_v62 }
 0x176   :  { %v359_v26 = vsel %vm140_vm6, %v353_v24, 0.0  ;;  %v356_v28 = vsel %vm140_vm6, %v352_v52, 0.0  ;;  %v365_v30 = vsel %vm140_vm6, %v355_v60, 0.0 }
 0x177   :  { %v362_v31 = vsel %vm140_vm6, %v354_v29, 0.0 }
 0x178   :  { %174 = vadd.xlane.f32.xlu1 %v173_v51  ;;  %171 = vadd.xlane.f32.xlu0 %v170_v23 }
 0x17c   :  { %360 = vadd.xlane.f32.xlu1 %v359_v26  ;;  %357 = vadd.xlane.f32.xlu0 %v356_v28 }
 0x180   :  { %366 = vadd.xlane.f32.xlu1 %v365_v30  ;;  %363 = vadd.xlane.f32.xlu0 %v362_v31 }
 0x201   :  { %v169_v36 = vpop.xlane.xlu1 %168  ;;  %v166_v33 = vpop.xlane.xlu0 %165 }
 0x202   :  { %v177_v38 = vadd.f32 %v169_v36, %v45_v34  ;;  %v176_v25 = vadd.f32 %v166_v33, %v44_v35 }
 0x204   :  { %v451_v40 = vmul.f32 -1.442695, %v177_v38  ;;  %v450_v41 = vmul.f32 -1.442695, %v176_v25 }
 0x205   :  { %v175_v42 = vpop.xlane.xlu1 %174  ;;  %v172_v43 = vpop.xlane.xlu0 %171 }
 0x206   :  { %481 = vpow2.f32 %v451_v40  ;;  %v179_v7 = vadd.f32 %v175_v42, %v47_v39  ;;  %v178_v47 = vadd.f32 %v172_v43, %v46_v58 }
 0x207   :  { %483 = vpow2.f32 %v450_v41 }
 0x208   :  { %v453_v48 = vmul.f32 -1.442695, %v179_v7  ;;  %v452_v44 = vmul.f32 -1.442695, %v178_v47 }
 0x209   :  { %v361_v49 = vpop.xlane.xlu1 %360  ;;  %v358_v53 = vpop.xlane.xlu0 %357 }
 0x20a   :  { %485 = vpow2.f32 %v453_v48  ;;  %v369_v54 = vadd.f32 %v361_v49, %v45_v34  ;;  %v368_v55 = vadd.f32 %v358_v53, %v44_v35 }
 0x20b   :  { %487 = vpow2.f32 %v452_v44 }
 0x20c   :  { %v454_v56 = vmul.f32 -1.442695, %v368_v55  ;;  %v455_v37 = vmul.f32 -1.442695, %v369_v54 }
 0x20d   :  { %v364_v27 = vpop.xlane.xlu0 %363  ;;  %v367_v46 = vpop.xlane.xlu1 %366 }
 0x20e   :  { %489 = vpow2.f32 %v454_v56  ;;  %v370_v45 = vadd.f32 %v364_v27, %v46_v58  ;;  %v371_v63 = vadd.f32 %v367_v46, %v47_v39 }
 0x20f   :  { %491 = vpow2.f32 %v455_v37 }
 0x210   :  { %v482_v57 = vpop.eup %481  ;;  %v456_v3 = vmul.f32 -1.442695, %v370_v45  ;;  %v457_v16 = vmul.f32 -1.442695, %v371_v63 }
 0x211   :  { %v484_v59 = vpop.eup %483  ;;  %v193_v61 = vadd.f32 1.0, %v482_v57 }
 0x212   :  { %v192_v62 = vadd.f32 1.0, %v484_v59 }
 0x213   :  { %493 = vrcp.f32 %v193_v61 }
 0x214   :  { %v486_v10 = vpop.eup %485  ;;  %495 = vrcp.f32 %v192_v62 }
 0x215   :  { %v488_v11 = vpop.eup %487  ;;  %497 = vpow2.f32 %v456_v3  ;;  %v195_v17 = vadd.f32 1.0, %v486_v10 }
 0x216   :  { %v194_v50 = vadd.f32 1.0, %v488_v11 }
 0x218   :  { %499 = vrcp.f32 %v194_v50  ;;  %v490_v22 = vpop.eup %489 }
 0x219   :  { %501 = vpow2.f32 %v457_v16  ;;  %v492_v51 = vpop.eup %491  ;;  %v384_v23 = vadd.f32 1.0, %v490_v22 }
 0x21a   :  { %503 = vrcp.f32 %v195_v17  ;;  %v385_v26 = vadd.f32 1.0, %v492_v51 }
 0x21b   :  { %505 = vrcp.f32 %v384_v23 }
 0x21c   :  { %507 = vrcp.f32 %v385_v26 }
 0x21d   :  { %v494_v24 = vpop.eup %493 }
 0x21e   :  { %v496_v52 = vpop.eup %495  ;;  %211 = vperm.xlu1 %464, %v494_v24  }
 0x21f   :  { %206 = vperm.xlu0 %463, %v496_v52   ;;  %v498_v28 = vpop.eup %497 }
 0x220   :  { %v386_v29 = vadd.f32 1.0, %v498_v28 }
 0x222   :  { %v500_v60 = vpop.eup %499  ;;  %509 = vrcp.f32 %v386_v29 }
 0x223   :  { %216 = vperm.xlu1 %464, %v500_v60   ;;  %v502_v30 = vpop.eup %501 }
 0x224   :  { %v504_v31 = vpop.eup %503  ;;  %v387_v32 = vadd.f32 1.0, %v502_v30 }
 0x225   :  { %v506_v34 = vpop.eup %505 }
 0x226   :  { %511 = vrcp.f32 %v387_v32  ;;  %v508_v35 = vpop.eup %507 }
 0x227   :  { %221 = vperm.xlu1 %464, %v504_v31  }
 0x22b   :  { %398 = vperm.xlu1 %464, %v506_v34  }
 0x22c   :  { %v510_v36 = vpop.eup %509 }
 0x22f   :  { %403 = vperm.xlu1 %464, %v508_v35  }
 0x230   :  { %v512_v33 = vpop.eup %511 }
 0x233   :  { %408 = vperm.xlu1 %464, %v510_v36  }
 0x237   :  { %413 = vperm.xlu1 %464, %v512_v33  }
 0x29d   :  { %v212_v38 = vpop.permute.xlu1 %211 }
 0x29e   :  { %v226_v25 = vmul.f32 %v212_v38, %v621_v5  ;;  %v227_v39 = vmul.f32 %v212_v38, %v623_v6  ;;  %v207_v58 = vpop.permute.xlu0 %206 }
 0x29f   :  { %v224_v40 = vmul.f32 %v207_v58, %v611_v0  ;;  %v225_v41 = vmul.f32 %v207_v58, %v613_v1 }
 0x2a0   :  { %234 = vst [vmem:[#allocation5 + $0x10] sm:$0xff] %v226_v25  ;;  %235 = vst [vmem:[#allocation5 + $0x18] sm:$0xff] %v227_v39 }
 0x2a1   :  { %232 = vst [vmem:[#allocation5] sm:$0xff] %v224_v40  ;;  %233 = vst [vmem:[#allocation5 + $0x8] sm:$0xff] %v225_v41 }
 0x2a2   :  { %v217_v42 = vpop.permute.xlu1 %216 }
 0x2a3   :  { %v228_v43 = vmul.f32 %v217_v42, %v635_v12  ;;  %v229_v7 = vmul.f32 %v217_v42, %v637_v13 }
 0x2a5   :  { %236 = vst [vmem:[#allocation5 + $0x20] sm:$0xff] %v228_v43  ;;  %237 = vst [vmem:[#allocation5 + $0x28] sm:$0xff] %v229_v7 }
 0x2a6   :  { %v222_v47 = vpop.permute.xlu1 %221 }
 0x2a7   :  { %v230_v5 = vmul.f32 %v222_v47, %v647_v18  ;;  %v231_v6 = vmul.f32 %v222_v47, %v649_v19 }
 0x2a9   :  { %238 = vst [vmem:[#allocation5 + $0x30] sm:$0xff] %v230_v5  ;;  %239 = vst [vmem:[#allocation5 + $0x38] sm:$0xff] %v231_v6 }
 0x2aa   :  { %v399_v0 = vpop.permute.xlu1 %398 }
 0x2ab   :  { %v416_v1 = vmul.f32 %v399_v0, %v615_v2  ;;  %v417_v48 = vmul.f32 %v399_v0, %v619_v4 }
 0x2ad   :  { %425 = vst [vmem:[#allocation5 + $0x40] sm:$0xff] %v416_v1  ;;  %426 = vst [vmem:[#allocation5 + $0x48] sm:$0xff] %v417_v48 }
 0x2ae   :  { %v404_v44 = vpop.permute.xlu1 %403 }
 0x2af   :  { %v418_v12 = vmul.f32 %v404_v44, %v627_v8  ;;  %v419_v13 = vmul.f32 %v404_v44, %v629_v9 }
 0x2b1   :  { %427 = vst [vmem:[#allocation5 + $0x50] sm:$0xff] %v418_v12  ;;  %428 = vst [vmem:[#allocation5 + $0x58] sm:$0xff] %v419_v13 }
 0x2b2   :  { %v409_v49 = vpop.permute.xlu1 %408 }
 0x2b3   :  { %v420_v18 = vmul.f32 %v409_v49, %v639_v14  ;;  %v421_v19 = vmul.f32 %v409_v49, %v641_v15 }
 0x2b5   :  { %429 = vst [vmem:[#allocation5 + $0x60] sm:$0xff] %v420_v18  ;;  %430 = vst [vmem:[#allocation5 + $0x68] sm:$0xff] %v421_v19 }
 0x2b6   :  { %v414_v2 = vpop.permute.xlu1 %413 }
 0x2b7   :  { %v422_v4 = vmul.f32 %v414_v2, %v651_v20  ;;  %v423_v53 = vmul.f32 %v414_v2, %v653_v21 }
 0x2b9   :  { %431 = vst [vmem:[#allocation5 + $0x70] sm:$0xff] %v422_v4  ;;  %432 = vst [vmem:[#allocation5 + $0x78] sm:$0xff] %v423_v53 }
 0x2ba   :  { %546 = shalt.err (!%p543_p12)
}
 0x2bb   :  { %s547_s9 = scalar_lea.hbm %s858_s5, 2048 }
 0x2bc   :  { %p548_p13 = scmp.ne.s32.totalorder %s858_s5, %s547_s9  ;;  %p551_p0 = scmp.lt.u32.totalorder %s547_s9, %s858_s5 }
 0x2be   :  { %p553_p1 = pnand %p551_p0, %p548_p13 }
 0x2c0   :  { %556 = shalt.err (!%p553_p1)
}
 0x2c1   :  { %444 = dma.vmem_to_hbm [thread:$0]  %s439_s6, 2048, %s858_s5, [#allocation4], %s562_s28, %s562_s28, %s563_s29  }
 0x2c2   :  { %559 = dma.done.wait [#allocation4], 2048  }
 0x2c3   :  { %560 = vsyncadd [#allocation4], 4294965248 }
 0x2c4   :  { %448 = vsyncpa [#allocation3], 1 }
 0x2c5   :  { %449 = vsyncpa [#allocation4], 1 }

</bundles_post_ra>
